<compile_context>
chip_gen: v7x
topology: tpu7x:2x2x1
jax: 0.10.0
libtpu: 0.0.40
codegen_flags: <defaults>
</compile_context>

<pallas_src>
import jax
import jax.numpy as jnp
from jax.experimental import pallas as pl
from jax.experimental.pallas import tpu as pltpu


def _round_up(x, m):
    return ((x + m - 1) // m) * m


def _pick_tile(padded, candidates=(512, 256, 128)):
    """Pick a lane-aligned tile size that divides `padded` (padded is a multiple of 128)."""
    if padded <= candidates[0]:
        return padded
    for c in candidates:
        if padded % c == 0:
            return c
    return candidates[-1]


# ------------------------------ kernels ------------------------------------


def _gemm_addrelu_f32out_kernel(x_ref, w_ref, b_ref, o_ref):
    """f32 output: accumulate directly into the K-resident output block (no scratch)."""
    kk = pl.program_id(2)

    @pl.when(kk == 0)
    def _init():
        o_ref[...] = jnp.zeros_like(o_ref)

    o_ref[...] += jnp.dot(x_ref[...], w_ref[...], preferred_element_type=jnp.float32)

    @pl.when(kk == pl.num_programs(2) - 1)
    def _finalize():
        y = o_ref[...] + b_ref[...]           # y = linear(x) (bias broadcast over rows)
        o_ref[...] = 2.0 * jnp.maximum(y, 0.0)  # relu(relu(y)+y) == 2*relu(y)


def _gemm_addrelu_acc_kernel(x_ref, w_ref, b_ref, o_ref, acc_ref):
    """Non-f32 output: f32 VMEM accumulator, cast on the final store."""
    kk = pl.program_id(2)

    @pl.when(kk == 0)
    def _init():
        acc_ref[...] = jnp.zeros_like(acc_ref)

    acc_ref[...] += jnp.dot(x_ref[...], w_ref[...], preferred_element_type=jnp.float32)

    @pl.when(kk == pl.num_programs(2) - 1)
    def _finalize():
        y = acc_ref[...] + b_ref[...]
        o_ref[...] = (2.0 * jnp.maximum(y, 0.0)).astype(o_ref.dtype)


# ------------------------------ wrapper ------------------------------------


def prepare_linear_params(weight, bias=None, *, compute_dtype=jnp.bfloat16):
    """Hoisted, call-invariant weight prep: transpose -> cast -> pad (done once)."""
    n_out, k_in = weight.shape
    k_pad = _round_up(k_in, 128)
    n_pad = _round_up(n_out, 128)

    w_kn = weight.T.astype(compute_dtype)                       # (K, N)
    if (k_pad, n_pad) != (k_in, n_out):
        w_kn = jnp.pad(w_kn, ((0, k_pad - k_in), (0, n_pad - n_out)))

    if bias is None:
        b_row = jnp.zeros((1, n_pad), jnp.float32)
    else:
        b_row = jnp.pad(bias.astype(jnp.float32), (0, n_pad - n_out)).reshape(1, n_pad)

    return {"w_kn": w_kn, "b_row": b_row, "n_out": n_out, "k_in": k_in,
            "compute_dtype": compute_dtype}


def _vmem_capacity_bytes():
    try:
        return int(getattr(pltpu.get_tpu_info(), "vmem_capacity_bytes", 64 * 1024 * 1024))
    except Exception:
        return 64 * 1024 * 1024   # conservative fallback (v7x-sized)


def ipex_linear_add_relu_prepared(x, params, *, tile_m=512):
    w_kn = params["w_kn"]
    b_row = params["b_row"]
    n_out = params["n_out"]
    k_in = params["k_in"]
    compute_dtype = params["compute_dtype"]
    k_pad, n_pad = w_kn.shape

    *lead, k_dim = x.shape
    assert k_dim == k_in, "in_features mismatch"
    m = 1
    for d in lead:
        m *= d
    out_dtype = x.dtype

    # ---------------- tiling ----------------
    tk = _pick_tile(k_pad)                    # contraction depth, lane-aligned
    tn = _pick_tile(n_pad)                    # output lane tile (lane-dense stores)

    in_item = jnp.dtype(compute_dtype).itemsize
    out_item = jnp.dtype(out_dtype).itemsize
    needs_scratch = out_dtype != jnp.float32

    vmem_cap = _vmem_capacity_bytes()
    budget = (vmem_cap * 3) // 4              # ~96 MiB on v5e/v6e, ~48 MiB on v7x

    row_align = 16 if in_item < 4 else 8      # bf16 sublane packing wants multiples of 16
    tm = _round_up(min(tile_m, _round_up(m, row_align)), row_align)

    def vmem_bytes(tm_):
        b = (2 * tm_ * tk * in_item           # x tile (double buffered)
             + 2 * tk * tn * in_item          # w tile (double buffered)
             + 2 * tm_ * tn * out_item        # out tile (double buffered)
             + 2 * tn * 4)                    # bias tile
        if needs_scratch:
            b += tm_ * tn * 4                 # f32 accumulator scratch
        return b

    while tm > row_align and vmem_bytes(tm) > budget:
        tm = _round_up(tm // 2, row_align)

    m_pad = _round_up(m, tm)

    # v7x heuristic (VMEM <= 64 MiB per TC, 2 TensorCores): expose >= 2 parallel tiles.
    if vmem_cap < 100 * 1024 * 1024:
        while (m_pad // tm) * (n_pad // tn) < 2 and tm >= 2 * max(row_align, 128):
            tm //= 2
            m_pad = _round_up(m, tm)

    # ---------------- activations: cast + pad only when needed ----------------
    x2d = x.reshape(m, k_dim)
    if x2d.dtype != compute_dtype:
        x2d = x2d.astype(compute_dtype)
    if (m_pad, k_pad) != (m, k_dim):
        x2d = jnp.pad(x2d, ((0, m_pad - m), (0, k_pad - k_dim)))

    grid = (m_pad // tm, n_pad // tn, k_pad // tk)

    kernel = _gemm_addrelu_acc_kernel if needs_scratch else _gemm_addrelu_f32out_kernel
    scratch = [pltpu.VMEM((tm, tn), jnp.float32)] if needs_scratch else []

    vlimit = max(int(vmem_bytes(tm) * 1.25) + (4 << 20), 16 << 20)
    vlimit = min(vlimit, budget)

    out2d = pl.pallas_call(
        kernel,
        out_shape=jax.ShapeDtypeStruct((m_pad, n_pad), out_dtype),
        grid=grid,
        in_specs=[
            pl.BlockSpec((tm, tk), lambda i, j, kk: (i, kk)),   # activations
            pl.BlockSpec((tk, tn), lambda i, j, kk: (kk, j)),   # weights (K, N tile)
            pl.BlockSpec((1, tn), lambda i, j, kk: (0, j)),     # bias (f32)
        ],
        out_specs=pl.BlockSpec((tm, tn), lambda i, j, kk: (i, j)),   # resident across K
        scratch_shapes=scratch,
        compiler_params=pltpu.CompilerParams(
            dimension_semantics=("parallel", "parallel", "arbitrary"),
            vmem_limit_bytes=vlimit),
        cost_estimate=pl.CostEstimate(
            flops=2 * m * k_dim * n_out,
            transcendentals=0,
            bytes_accessed=(m * k_dim + k_pad * n_pad) * in_item
                           + (m * n_out) * out_item + n_out * 4),
    )(x2d, w_kn, b_row)

    out = out2d
    if (m_pad, n_pad) != (m, n_out):
        out = out2d[:m, :n_out]
    return out.reshape(*lead, n_out)
    # TODO(synk): for inference loops where the padded bf16 weight is small, keep W fully
    # VMEM-resident across M tiles (constant weight block index / no K axis) to cut
    # weight re-streaming from HBM to a single read.


def ipex_linear_add_relu(x, weight, bias=None, *, compute_dtype=jnp.bfloat16, tile_m=512):
    """Convenience one-shot wrapper (prep + kernel). Prefer prepare_* + *_prepared in loops."""
    params = prepare_linear_params(weight, bias, compute_dtype=compute_dtype)
    return ipex_linear_add_relu_prepared(x, params, tile_m=tile_m)


# ------------------------------ demo / test ---------------------------------


if __name__ == "__main__":
    key = jax.random.PRNGKey(0)
    kx, kw, kb = jax.random.split(key, 3)

    # small shapes consistent with the module: Linear(in_features=32, out_features=32, bias=True)
    B, S, IN, OUT = 2, 8, 32, 32
    x = jax.random.normal(kx, (B, S, IN), jnp.float32)
    weight = jax.random.normal(kw, (OUT, IN), jnp.float32) * 0.1   # stand-in for nn.Linear init
    bias = jax.random.normal(kb, (OUT,), jnp.float32) * 0.1

    # weight prep (transpose + pad + bf16 cast) hoisted out of the per-call hot path
    params = prepare_linear_params(weight, bias, compute_dtype=jnp.bfloat16)
    out = jax.block_until_ready(ipex_linear_add_relu_prepared(x, params))

    # reference at the kernel's compute precision (bf16 inputs, f32 accumulate)
    xb = x.astype(jnp.bfloat16).astype(jnp.float32)
    wb = weight.astype(jnp.bfloat16).astype(jnp.float32)
    yb = xb @ wb.T + bias
    ref_bf16 = jnp.maximum(jnp.maximum(yb, 0.0) + yb, 0.0)

    # original-module (full f32) reference:
    #   a = relu(linear(x)); b = linear(x); return relu(a.add_(b))
    y32 = x @ weight.T + bias
    ref_f32 = jnp.maximum(jnp.maximum(y32, 0.0) + y32, 0.0)

    assert out.shape == ref_f32.shape == (B, S, OUT)
    assert jnp.allclose(out, ref_bf16, atol=1e-4, rtol=1e-4)
    assert jnp.allclose(out, ref_f32, atol=5e-2, rtol=5e-2)
    print("KERNEL_OK")
</pallas_src>

<mosaic_0001>
module attributes {stable_mosaic.version = 11 : i64} {
  func.func @_gemm_addrelu_f32out_kernel(%arg0: i32, %arg1: i32, %arg2: i32, %arg3: memref<16x128xbf16, #tpu.memory_space<vmem>>, %arg4: memref<128x128xbf16, #tpu.memory_space<vmem>>, %arg5: memref<1x128xf32, #tpu.memory_space<vmem>>, %arg6: memref<16x128xf32, #tpu.memory_space<vmem>>) attributes {dimension_semantics = [#tpu.dimension_semantics<parallel>, #tpu.dimension_semantics<parallel>, #tpu.dimension_semantics<arbitrary>], iteration_bounds = array<i64: 1, 1, 1>, scalar_prefetch = 0 : i64, scratch_operands = 0 : i64, tpu.core_type = #tpu.core_type<tc>, window_params = [{transform_indices = @transform_0, window_bounds = array<i64: 16, 128>}, {transform_indices = @transform_1, window_bounds = array<i64: 128, 128>}, {transform_indices = @transform_2, window_bounds = array<i64: 1, 128>}, {transform_indices = @transform_3, window_bounds = array<i64: 16, 128>}]} {
    %c0_i32 = arith.constant 0 : i32
    %0 = arith.cmpi eq, %arg2, %c0_i32 : i32
    %1 = arith.extui %0 : i1 to i32
    %c0_i32_0 = arith.constant 0 : i32
    %2 = arith.cmpi ne, %1, %c0_i32_0 : i32
    scf.if %2 {
      %cst_10 = arith.constant 0.000000e+00 : f32
      %12 = vector.broadcast %cst_10 : f32 to vector<16x128xf32>
      %c0_11 = arith.constant 0 : index
      %c0_12 = arith.constant 0 : index
      %13 = vector.load %arg6[%c0_11, %c0_12] : memref<16x128xf32, #tpu.memory_space<vmem>>, vector<16x128xf32>
      tpu.vector_store %arg6[%c0_11, %c0_12], %12 {strides = array<i32>} : memref<16x128xf32, #tpu.memory_space<vmem>>, vector<16x128xf32>,
    } else {
    }
    %c0 = arith.constant 0 : index
    %c0_1 = arith.constant 0 : index
    %3 = vector.load %arg6[%c0, %c0_1] : memref<16x128xf32, #tpu.memory_space<vmem>>, vector<16x128xf32>
    %c0_2 = arith.constant 0 : index
    %c0_3 = arith.constant 0 : index
    %4 = vector.load %arg3[%c0_2, %c0_3] : memref<16x128xbf16, #tpu.memory_space<vmem>>, vector<16x128xbf16>
    %c0_4 = arith.constant 0 : index
    %c0_5 = arith.constant 0 : index
    %5 = vector.load %arg4[%c0_4, %c0_5] : memref<128x128xbf16, #tpu.memory_space<vmem>>, vector<128x128xbf16>
    %cst = arith.constant dense<0.000000e+00> : vector<16x128xf32>
    %6 = tpu.matmul %4, %5, %cst {dimension_numbers = #tpu.dot_dimension_numbers<[1], [0], [0], [1], [0, 0, 1, 1], [], []>} : vector<16x128xbf16>, vector<128x128xbf16>, vector<16x128xf32> -> vector<16x128xf32>
    %7 = arith.addf %3, %6 : vector<16x128xf32>
    %c0_6 = arith.constant 0 : index
    %c0_7 = arith.constant 0 : index
    %8 = vector.load %arg6[%c0_6, %c0_7] : memref<16x128xf32, #tpu.memory_space<vmem>>, vector<16x128xf32>
    tpu.vector_store %arg6[%c0_6, %c0_7], %7 {strides = array<i32>} : memref<16x128xf32, #tpu.memory_space<vmem>>, vector<16x128xf32>,
    %c0_i32_8 = arith.constant 0 : i32
    %9 = arith.cmpi eq, %arg2, %c0_i32_8 : i32
    %10 = arith.extui %9 : i1 to i32
    %c0_i32_9 = arith.constant 0 : i32
    %11 = arith.cmpi ne, %10, %c0_i32_9 : i32
    scf.if %11 {
      %c0_10 = arith.constant 0 : index
      %c0_11 = arith.constant 0 : index
      %12 = vector.load %arg6[%c0_10, %c0_11] : memref<16x128xf32, #tpu.memory_space<vmem>>, vector<16x128xf32>
      %c0_12 = arith.constant 0 : index
      %c0_13 = arith.constant 0 : index
      %13 = vector.load %arg5[%c0_12, %c0_13] : memref<1x128xf32, #tpu.memory_space<vmem>>, vector<1x128xf32>
      %14 = vector.broadcast %13 : vector<1x128xf32> to vector<16x128xf32>
      %15 = arith.addf %12, %14 : vector<16x128xf32>
      %cst_14 = arith.constant 0.000000e+00 : f32
      %16 = vector.broadcast %cst_14 : f32 to vector<16x128xf32>
      %17 = arith.maximumf %15, %16 : vector<16x128xf32>
      %cst_15 = arith.constant 2.000000e+00 : f32
      %18 = vector.broadcast %cst_15 : f32 to vector<16x128xf32>
      %19 = arith.mulf %18, %17 : vector<16x128xf32>
      %c0_16 = arith.constant 0 : index
      %c0_17 = arith.constant 0 : index
      %20 = vector.load %arg6[%c0_16, %c0_17] : memref<16x128xf32, #tpu.memory_space<vmem>>, vector<16x128xf32>
      tpu.vector_store %arg6[%c0_16, %c0_17], %19 {strides = array<i32>} : memref<16x128xf32, #tpu.memory_space<vmem>>, vector<16x128xf32>,
    } else {
    }
    return
  }
  func.func @transform_0(%arg0: i32, %arg1: i32, %arg2: i32) -> (i32, i32) {
    %c0_i32 = arith.constant 0 : i32
    return %arg0, %arg2 : i32, i32
  }
  func.func @transform_1(%arg0: i32, %arg1: i32, %arg2: i32) -> (i32, i32) {
    %c0_i32 = arith.constant 0 : i32
    return %arg2, %arg1 : i32, i32
  }
  func.func @transform_2(%arg0: i32, %arg1: i32, %arg2: i32) -> (i32, i32) {
    %c0_i32 = arith.constant 0 : i32
    %c0_i32_0 = arith.constant 0 : i32
    return %c0_i32, %arg1 : i32, i32
  }
  func.func @transform_3(%arg0: i32, %arg1: i32, %arg2: i32) -> (i32, i32) {
    %c0_i32 = arith.constant 0 : i32
    return %arg0, %arg1 : i32, i32
  }
}

</mosaic_0001>

<bundles_post_ra>
// kernel: tpu_custom_call.1
= control target key start
LH: loop header
LB: loop body
LE: loop exit
PB: predicated region body
PF: predicated region fallthrough
CT: control target
= control target key end

     0   :  { %8 = vsyncpa [#allocation3], 0  ;;  %s404_s0 = inlined_call_operand.hbm [shape: bf16[16,128], index: 0, kind: input, shape index: {}]   ;;  %s405_s1 = inlined_call_operand.hbm [shape: bf16[128,128], index: 1, kind: input, shape index: {}]   ;;  %s406_s2 = inlined_call_operand.vmem [shape: f32[1,128], index: 2, kind: input, shape index: {}]   ;;  %s407_s3 = inlined_call_operand.hbm [shape: f32[16,128], index: 3, kind: output, shape index: {}]  }
   0x1   :  { %9 = vsyncpa [#allocation6], 0 }
   0x2   :  { %10 = vsyncpa [#allocation4], 0  ;;  %s336_s12 = smov [#allocation2]   ;;  %s264_s16 = scalar_lea.hbm %s404_s0, 128 }
   0x3   :  { %s16_s13 = sshll.u32 %s336_s12, 4  ;;  %p265_p0 = scmp.ne.s32.totalorder %s404_s0, %s264_s16  ;;  %s17_s13 = int_to_ptr.vmem [resolvable:$true] %s16_s13 }
   0x4   :  { %p268_p1 = scmp.lt.u32.totalorder %s264_s16, %s404_s0 }
   0x6   :  { %p270_p2 = pnand %p268_p1, %p265_p0 }
   0x8   :  { %273 = shalt.err (!%p270_p2)
}
   0x9   :  { %s274_s21 = scalar_lea.vmem %s17_s13, 128  ;;  %p279_p4 = scmp.lt.s32.totalorder %s17_s13, %s17_s13 }
   0xa   :  { %p275_p3 = scmp.ne.s32.totalorder %s17_s13, %s274_s21  ;;  %p280_p5 = scmp.lt.s32.totalorder %s274_s21, %s274_s21 }
   0xc   :  { %p281_p6 = por %p280_p5, %p279_p4 }
   0xe   :  { %p282_p7 = pnand %p281_p6, %p275_p3 }
  0x10   :  { %285 = shalt.err (!%p282_p7)
}
  0x11   :  { %s337_s22 = smov 64   ;;  %s338_s23 = smov 4  }
  0x12   :  { %22 = dma.hbm_to_vmem [thread:$0]  %s404_s0, 128, %s17_s13, [#allocation3], %s337_s22, %s337_s22, %s338_s23  }
  0x13   :  { %s339_s26 = smov [#allocation5]   ;;  %s286_s30 = scalar_lea.hbm %s405_s1, 1024 }
  0x14   :  { %s28_s27 = sshll.u32 %s339_s26, 4  ;;  %p287_p8 = scmp.ne.s32.totalorder %s405_s1, %s286_s30  ;;  %s29_s27 = int_to_ptr.vmem [resolvable:$true] %s28_s27 }
  0x15   :  { %p290_p9 = scmp.lt.u32.totalorder %s286_s30, %s405_s1 }
  0x17   :  { %p292_p10 = pnand %p290_p9, %p287_p8 }
  0x19   :  { %295 = shalt.err (!%p292_p10)
}
  0x1a   :  { %s296_s8 = scalar_lea.vmem %s29_s27, 1024  ;;  %p301_p12 = scmp.lt.s32.totalorder %s29_s27, %s29_s27 }
  0x1b   :  { %p297_p11 = scmp.ne.s32.totalorder %s29_s27, %s296_s8  ;;  %p302_p13 = scmp.lt.s32.totalorder %s296_s8, %s296_s8 }
  0x1d   :  { %p303_p0 = por %p302_p13, %p301_p12 }
  0x1f   :  { %p304_p1 = pnand %p303_p0, %p297_p11 }
  0x21   :  { %307 = shalt.err (!%p304_p1)
}
  0x22   :  { %34 = dma.hbm_to_vmem [thread:$0]  %s405_s1, 1024, %s29_s27, [#allocation6], %s337_s22, %s337_s22, %s338_s23  }
  0x23   :  { %330 = dma.done.wait [#allocation3], 128  }
  0x24   :  { %331 = vsyncadd [#allocation3], 4294967168 }
  0x25   :  { %332 = dma.done.wait [#allocation6], 1024  }
  0x26   :  { %333 = vsyncadd [#allocation6], 4294966272  ;;  %v340_v0 = vmov 0.0   ;;  %vm341_vm0 = vmmov 0   ;;  %v255_v1 = vld [vmem:[#allocation5] sm:$0xff]   ;;  %v256_v2 = vld [vmem:[#allocation5 + $0x8] sm:$0xff]  }
  0x27   :  { %226 = vmatprep.subr.bf16.mxu0 %v340_v0  ;;  %242 = vmatprep.mubr.msk.bf16.mxu0 %vm341_vm0, %v340_v0  ;;  %v257_v3 = vld [vmem:[#allocation5 + $0x10] sm:$0xff]   ;;  %v258_v4 = vld [vmem:[#allocation5 + $0x18] sm:$0xff]   ;;  %v259_v5 = vld [vmem:[#allocation5 + $0x20] sm:$0xff]   ;;  %s342_s11 = smov [#allocation7]  }
  0x28   :  { %227 = vmatpush3.bf16.msra.mxu0 %v255_v1  ;;  %v260_v6 = vld [vmem:[#allocation5 + $0x28] sm:$0xff]   ;;  %v261_v7 = vld [vmem:[#allocation5 + $0x30] sm:$0xff]   ;;  %v262_v8 = vld [vmem:[#allocation5 + $0x38] sm:$0xff]   ;;  %s194_s12 = sshll.u32 %s342_s11, 4  ;;  %s195_s12 = int_to_ptr.vmem [resolvable:$true] %s194_s12 }
  0x29   :  { %228 = vmatprep.subr.bf16.mxu0 %v340_v0  ;;  %v263_v9 = vld [vmem:[#allocation2] sm:$0xff]   ;;  %s308_s13 = scalar_lea.vmem %s195_s12, 256  ;;  %p313_p3 = scmp.lt.s32.totalorder %s195_s12, %s195_s12 }
  0x2a   :  { %v216_v11 = vld [vmem:[%s406_s2] ss:$0 sm:$0xff]  ;;  %p309_p2 = scmp.ne.s32.totalorder %s195_s12, %s308_s13  ;;  %p314_p4 = scmp.lt.s32.totalorder %s308_s13, %s308_s13 }
  0x2c   :  { %229 = vmatpush3.bf16.msra.mxu0 %v256_v2  ;;  %p315_p5 = por %p314_p4, %p313_p3 }
  0x2d   :  { %230 = vmatprep.subr.bf16.mxu0 %v340_v0 }
  0x2e   :  { %p316_p6 = pnand %p315_p5, %p309_p2 }
  0x30   :  { %231 = vmatpush3.bf16.msra.mxu0 %v257_v3 }
  0x31   :  { %232 = vmatprep.subr.bf16.mxu0 %v340_v0 }
  0x34   :  { %233 = vmatpush3.bf16.msra.mxu0 %v258_v4 }
  0x35   :  { %234 = vmatprep.subr.bf16.mxu0 %v340_v0 }
  0x38   :  { %235 = vmatpush3.bf16.msra.mxu0 %v259_v5 }
  0x39   :  { %236 = vmatprep.subr.bf16.mxu0 %v340_v0 }
  0x3c   :  { %237 = vmatpush3.bf16.msra.mxu0 %v260_v6 }
  0x3d   :  { %238 = vmatprep.subr.bf16.mxu0 %v340_v0 }
  0x40   :  { %239 = vmatpush3.bf16.msra.mxu0 %v261_v7 }
  0x41   :  { %240 = vmatprep.subr.bf16.mxu0 %v340_v0 }
  0x44   :  { %241 = vmatpush3.bf16.msra.mxu0 %v262_v8 }
  0x47   :  { %243 = vmatmul.mubr.bf16.vlgmr.msra.gmra.mrb[0].mxu0 %v263_v9 }
 0x11a   :  { %v158_v10 = vpop.f32.mrb[0].mxu0 }
 0x11b   :  { %v244_v12 = vpop.f32.mrb[1].mxu0  ;;  %v181_v15 = vadd.f32 %v216_v11, %v158_v10 }
 0x11c   :  { %v161_v13 = vpop.f32.mrb[2].mxu0 }
 0x11d   :  { %v245_v14 = vpop.f32.mrb[3].mxu0  ;;  %v182_v16 = vadd.f32 %v216_v11, %v161_v13  ;;  %v183_v17 = vmax.f32 %v181_v15, 0.0 }
 0x11f   :  { %v184_v18 = vmax.f32 %v182_v16, 0.0  ;;  %v185_v19 = vmul.f32 2.0, %v183_v17 }
 0x121   :  { %v186_v20 = vmul.f32 2.0, %v184_v18  ;;  %187 = vst [vmem:[#allocation7] sm:$0xff] %v185_v19 }
 0x123   :  { %188 = vst [vmem:[#allocation7 + $0x8] sm:$0xff] %v186_v20 }
 0x124   :  { %319 = shalt.err (!%p316_p6)
}
 0x125   :  { %s320_s15 = scalar_lea.hbm %s407_s3, 256 }
 0x126   :  { %p321_p7 = scmp.ne.s32.totalorder %s407_s3, %s320_s15  ;;  %p324_p8 = scmp.lt.u32.totalorder %s320_s15, %s407_s3 }
 0x128   :  { %p326_p9 = pnand %p324_p8, %p321_p7 }
 0x12a   :  { %329 = shalt.err (!%p326_p9)
}
 0x12b   :  { %s343_s20 = smov 128   ;;  %s344_s21 = smov 8  }
 0x12c   :  { %200 = dma.vmem_to_hbm [thread:$0]  %s195_s12, 256, %s407_s3, [#allocation4], %s343_s20, %s343_s20, %s344_s21  }
 0x12d   :  { %334 = dma.done.wait [#allocation4], 256  }
 0x12e   :  { %335 = vsyncadd [#allocation4], 4294967040 }
 0x12f   :  { %204 = vsyncpa [#allocation3], 1 }
 0x130   :  { %205 = vsyncpa [#allocation6], 1 }
 0x131   :  { %206 = vsyncpa [#allocation4], 1 }

</bundles_post_ra>
